<compile_context>
chip_gen: v7x
topology: tpu7x:2x2x1
jax: 0.10.0
libtpu: 0.0.40
codegen_flags: <defaults>
</compile_context>

<pallas_src>
import functools

import jax
import jax.numpy as jnp
from jax.experimental import pallas as pl
from jax.experimental.pallas import tpu as pltpu


def _round_up(a, b):
    return (a + b - 1) // b * b


def _upsample_kernel(*refs, bn, bh, H, W, C, has_halo):
    """One grid step: `bn` whole images (bh == H) or `bh` H-rows of one image (bn == 1).

    Refs (in order):
      x_ref    : (bn, C, bh*W)    lane-dense NCHW block (C on sublanes, flat (h, w) on lanes)
      halo_ref : (1,  C, halo_w)  only when has_halo: first W lanes = input row j0+bh
      w_ref    : (3C, C)          packed transposed taps [W1^T; W2^T; W0^T]
      b_ref    : (C, 1)           bias (lane-broadcasts over the block)
      o_ref    : (bn, C, 2*bh*W)  even/odd interleaved output rows (NCHW, flat lanes)
    """
    if has_halo:
        x_ref, halo_ref, w_ref, b_ref, o_ref = refs
    else:
        x_ref, w_ref, b_ref, o_ref = refs

    wp = w_ref[...]                                     # (3C, C)
    b = b_ref[...]                                      # (C, 1)

    if has_halo:
        # Next-row (W0) tap for this block's last input row.  It is real data except when that
        # row is the image's last row (h == H-1): the transposed conv sees zero there, so gate
        # with a scalar select instead of a full-block mask.
        jb = pl.program_id(1)
        not_last = ((jb + 1) * bh) < H
        halo_row = halo_ref[0][:, :W]                   # (C, W)
        halo_tap = jnp.dot(wp[2 * C:3 * C, :], halo_row,
                           preferred_element_type=jnp.float32)
        halo_tap = jnp.where(not_last, halo_tap, jnp.zeros_like(halo_tap))

    for i in range(bn):                                 # static unroll over images in the block
        xb = x_ref[i]                                   # (C, bh*W)
        # Single MXU pass over the block computes all three taps at once.
        t = jnp.dot(wp, xb, preferred_element_type=jnp.float32)       # (3C, bh*W)
        ye = t[0 * C:1 * C, :] + b                      # even output rows
        to = t[1 * C:2 * C, :] + b                      # odd rows, same-row (W2) tap
        t0 = t[2 * C:3 * C, :]                          # next-row (W0) tap -> previous odd row

        # W-granular even/odd interleave fused into the store path.  Everything above is
        # whole-block; only this interleave is chunked (unavoidable in NCHW when W < 128).
        for k in range(bh):
            lo = k * W
            o_ref[i, :, 2 * lo:2 * lo + W] = ye[:, lo:lo + W].astype(o_ref.dtype)
            yo = to[:, lo:lo + W]
            if k + 1 < bh:
                yo = yo + t0[:, lo + W:lo + 2 * W]
            elif has_halo:
                yo = yo + halo_tap
            o_ref[i, :, 2 * lo + W:2 * lo + 2 * W] = yo.astype(o_ref.dtype)


def _pick_tiling(N, C, H, W, itemsize, target_bytes):
    """Choose (bn, bh): bn whole images per block (bh == H), or bn == 1 with bh | H."""
    img_bytes = C * H * W * itemsize
    if img_bytes <= target_bytes:
        cap = target_bytes // img_bytes
        cap = min(cap, max(1, 128 // max(2 * H, 1)), 16)     # bound per-block store unroll
        if N >= 8:
            cap = min(cap, N // 8)                           # keep >= 8 steps for pipelining
        elif N >= 2:
            cap = min(cap, max(1, N // 2))                   # never collapse to one grid step
        cap = max(1, min(cap, N))
        for d in range(cap, 0, -1):
            if N % d == 0:
                return d, H
        return 1, H
    # Image too big for one block: split H.  Require bh | H, lane-dense blocks
    # (bh*W % 128 == 0) and a 128-lane-addressable halo row.
    halo_ok = (W % 128 == 0) or (128 % W == 0)
    cands = [d for d in range(1, H) if H % d == 0 and (d * W) % 128 == 0 and d <= 128]
    if halo_ok and cands:
        fit = [d for d in cands if d * W * C * itemsize <= target_bytes]
        return (1, max(fit)) if fit else (1, min(cands))
    # Fall back: one whole image per block (big, but always legal and correct).
    return 1, H


def upsample2x_tf(x, weight, bias, *, target_block_bytes=2 << 20):
    """x: (N, C, H, W) f32, weight: (Cin, Cout, 3, 1), bias: (Cout,) -> (N, C, 2H, W)."""
    N, C, H, W = x.shape
    assert weight.shape == (C, C, 3, 1), weight.shape
    if x.dtype != jnp.float32:
        # TODO(synk): dtype-aware tiling (bf16 packs 16 sublanes); f32-only fast path for now.
        x = x.astype(jnp.float32)
    itemsize = 4

    bn, bh = _pick_tiling(N, C, H, W, itemsize, target_block_bytes)
    has_halo = bh < H
    assert (not has_halo) or bn == 1
    M = bh * W

    # Free reshapes of contiguous NCHW data: no relayout passes in HBM.
    x3 = x.reshape(N, C, H * W)
    # Packed transposed taps: rows [0:C)=W1^T (even), [C:2C)=W2^T (odd, same row),
    # [2C:3C)=W0^T (odd, next row).
    wp = jnp.concatenate([weight[:, :, 1, 0].T,
                          weight[:, :, 2, 0].T,
                          weight[:, :, 0, 0].T], axis=0).astype(jnp.float32)
    b2 = bias.reshape(C, 1).astype(jnp.float32)

    grid = (N // bn, H // bh)

    in_specs = [pl.BlockSpec((bn, C, M), lambda nb, jb: (nb, 0, jb))]
    args = [x3]
    if has_halo:
        halo_w = W if W % 128 == 0 else 128
        hs = M // halo_w                      # halo block-index step per jb
        last_blk = H * W // halo_w - 1        # clamp for the last block (content unused there)
        in_specs.append(pl.BlockSpec(
            (1, C, halo_w),
            lambda nb, jb: (nb, 0, jnp.minimum((jb + 1) * hs, last_blk))))
        args.append(x3)

    # Constant-index-map operands (fetched once).  Large weights are single-buffered so they do
    # not hold 2x 3*C*C f32 of VMEM (matters on v7x's 64 MiB VMEM at large C).
    single_buffer_w = 2 * 3 * C * C * itemsize > (2 << 20)
    w_kwargs = dict(pipeline_mode=pl.Buffered(1)) if single_buffer_w else {}
    in_specs.append(pl.BlockSpec((3 * C, C), lambda nb, jb: (0, 0), **w_kwargs))
    in_specs.append(pl.BlockSpec((C, 1), lambda nb, jb: (0, 0)))
    args += [wp, b2]

    out_specs = pl.BlockSpec((bn, C, 2 * M), lambda nb, jb: (nb, 0, jb))

    # Padding-aware VMEM budget: double-buffered in/out/halo/bias blocks, weights, and the f32
    # matmul temporaries; clamped to 40 MiB (safe headroom on v7x's 64 MiB VMEM, far above
    # v5e's 16 MiB scoped default).
    Cs = _round_up(C, 8)
    Mp = _round_up(M, 128)
    in_blk = bn * Cs * Mp * itemsize
    out_blk = bn * Cs * _round_up(2 * M, 128) * itemsize
    halo_blk = Cs * 128 * itemsize if has_halo else 0
    w_blk = _round_up(3 * C, 8) * _round_up(C, 128) * itemsize
    b_blk = Cs * 128 * itemsize
    tmp = (_round_up(3 * C, 8) + 2 * Cs) * Mp * itemsize
    vmem_need = (2 * (in_blk + out_blk + halo_blk + b_blk)
                 + (1 if single_buffer_w else 2) * w_blk + tmp + (2 << 20))
    vmem_limit = int(min(max(vmem_need, 16 << 20), 40 << 20))

    flops = 2 * 3 * C * C * N * H * W
    bytes_accessed = 3 * N * C * H * W * itemsize + 3 * C * C * itemsize + C * itemsize

    kernel = functools.partial(_upsample_kernel, bn=bn, bh=bh, H=H, W=W, C=C,
                               has_halo=has_halo)
    out = pl.pallas_call(
        kernel,
        out_shape=jax.ShapeDtypeStruct((N, C, 2 * H * W), x.dtype),
        grid=grid,
        in_specs=in_specs,
        out_specs=out_specs,
        compiler_params=pltpu.CompilerParams(
            dimension_semantics=("parallel", "parallel"),
            vmem_limit_bytes=vmem_limit),
        cost_estimate=pl.CostEstimate(flops=flops, transcendentals=0,
                                      bytes_accessed=bytes_accessed),
    )(*args)

    # Free reshape: lanes are already ordered as (2h + parity)*W + w.
    return out.reshape(N, C, 2 * H, W)


def _reference(x, weight, bias):
    """Pure-JAX reference for ConvTranspose2d via lhs-dilated convolution."""
    N, C, H, W = x.shape
    w_conv = jnp.transpose(jnp.flip(weight, axis=(2, 3)), (1, 0, 2, 3))
    out = jax.lax.conv_general_dilated(
        x, w_conv,
        window_strides=(1, 1),
        padding=((1, 2), (0, 0)),        # (kh-1-ph, kh-1-ph+output_padding_h)
        lhs_dilation=(2, 1),
        rhs_dilation=(1, 1),
        dimension_numbers=("NCHW", "OIHW", "NCHW"))
    return out + bias.reshape(1, C, 1, 1)


if __name__ == "__main__":
    key = jax.random.PRNGKey(0)
    k_x, k_w, k_b = jax.random.split(key, 3)

    N, C, H, W = 2, 4, 16, 16
    x = jax.random.normal(k_x, (N, C, H, W), dtype=jnp.float32)
    # Deterministic parameter init (shapes match nn.ConvTranspose2d(C, C, (3,1), ...)).
    fan = C * 3 * 1
    bound = 1.0 / (fan ** 0.5)
    weight = jax.random.uniform(k_w, (C, C, 3, 1), jnp.float32, -bound, bound)
    bias = jax.random.uniform(k_b, (C,), jnp.float32, -bound, bound)

    out = jax.block_until_ready(jax.jit(upsample2x_tf)(x, weight, bias))
    ref = jax.block_until_ready(_reference(x, weight, bias))

    assert out.shape == (N, C, 2 * H, W), out.shape
    assert jnp.allclose(out, ref, atol=1e-5, rtol=1e-5), float(
        jnp.max(jnp.abs(out - ref)))

    print("KERNEL_OK")
</pallas_src>

<mosaic_0001>
module attributes {stable_mosaic.version = 11 : i64} {
  func.func @_upsample_kernel(%arg0: i32, %arg1: i32, %arg2: memref<1x4x256xf32, #tpu.memory_space<vmem>>, %arg3: memref<12x4xf32, #tpu.memory_space<vmem>>, %arg4: memref<4x1xf32, #tpu.memory_space<vmem>>, %arg5: memref<1x4x512xf32, #tpu.memory_space<vmem>>) attributes {dimension_semantics = [#tpu.dimension_semantics<parallel>, #tpu.dimension_semantics<parallel>], iteration_bounds = array<i64: 2, 1>, scalar_prefetch = 0 : i64, scratch_operands = 0 : i64, tpu.core_type = #tpu.core_type<tc>, window_params = [{transform_indices = @transform_0, window_bounds = array<i64: 1, 4, 256>}, {pipeline_mode = #tpu.pipeline_mode<synchronous>, transform_indices = @transform_1, window_bounds = array<i64: 12, 4>}, {pipeline_mode = #tpu.pipeline_mode<synchronous>, transform_indices = @transform_2, window_bounds = array<i64: 4, 1>}, {transform_indices = @transform_3, window_bounds = array<i64: 1, 4, 512>}]} {
    %c0 = arith.constant 0 : index
    %c0_0 = arith.constant 0 : index
    %0 = vector.load %arg3[%c0, %c0_0] : memref<12x4xf32, #tpu.memory_space<vmem>>, vector<12x4xf32>
    %c0_1 = arith.constant 0 : index
    %c0_2 = arith.constant 0 : index
    %1 = vector.load %arg4[%c0_1, %c0_2] : memref<4x1xf32, #tpu.memory_space<vmem>>, vector<4x1xf32>
    %c0_3 = arith.constant 0 : index
    %c0_4 = arith.constant 0 : index
    %c0_5 = arith.constant 0 : index
    %2 = vector.load %arg2[%c0_3, %c0_4, %c0_5] : memref<1x4x256xf32, #tpu.memory_space<vmem>>, vector<1x4x256xf32>
    %3 = vector.shape_cast %2 : vector<1x4x256xf32> to vector<4x256xf32>
    %cst = arith.constant dense<0.000000e+00> : vector<12x256xf32>
    %4 = tpu.matmul %0, %3, %cst {dimension_numbers = #tpu.dot_dimension_numbers<[1], [0], [0], [1], [0, 0, 1, 1], [], []>} : vector<12x4xf32>, vector<4x256xf32>, vector<12x256xf32> -> vector<12x256xf32>
    %5 = vector.extract_strided_slice %4 {offsets = [0, 0], sizes = [4, 256], strides = [1, 1]} : vector<12x256xf32> to vector<4x256xf32>
    %6 = vector.broadcast %1 : vector<4x1xf32> to vector<4x256xf32>
    %7 = arith.addf %5, %6 : vector<4x256xf32>
    %8 = vector.extract_strided_slice %4 {offsets = [4, 0], sizes = [4, 256], strides = [1, 1]} : vector<12x256xf32> to vector<4x256xf32>
    %9 = vector.broadcast %1 : vector<4x1xf32> to vector<4x256xf32>
    %10 = arith.addf %8, %9 : vector<4x256xf32>
    %11 = vector.extract_strided_slice %4 {offsets = [8, 0], sizes = [4, 256], strides = [1, 1]} : vector<12x256xf32> to vector<4x256xf32>
    %12 = vector.extract_strided_slice %7 {offsets = [0, 0], sizes = [4, 16], strides = [1, 1]} : vector<4x256xf32> to vector<4x16xf32>
    %c0_6 = arith.constant 0 : index
    %c0_7 = arith.constant 0 : index
    %c0_8 = arith.constant 0 : index
    %13 = vector.load %arg5[%c0_6, %c0_7, %c0_8] : memref<1x4x512xf32, #tpu.memory_space<vmem>>, vector<1x4x16xf32>
    %14 = vector.shape_cast %13 : vector<1x4x16xf32> to vector<4x16xf32>
    %15 = vector.shape_cast %12 : vector<4x16xf32> to vector<1x4x16xf32>
    tpu.vector_store %arg5[%c0_6, %c0_7, %c0_8], %15 {strides = array<i32>} : memref<1x4x512xf32, #tpu.memory_space<vmem>>, vector<1x4x16xf32>,
    %16 = vector.extract_strided_slice %10 {offsets = [0, 0], sizes = [4, 16], strides = [1, 1]} : vector<4x256xf32> to vector<4x16xf32>
    %17 = vector.extract_strided_slice %11 {offsets = [0, 16], sizes = [4, 16], strides = [1, 1]} : vector<4x256xf32> to vector<4x16xf32>
    %18 = arith.addf %16, %17 : vector<4x16xf32>
    %c0_9 = arith.constant 0 : index
    %c0_10 = arith.constant 0 : index
    %c16 = arith.constant 16 : index
    %19 = vector.load %arg5[%c0_9, %c0_10, %c16] : memref<1x4x512xf32, #tpu.memory_space<vmem>>, vector<1x4x16xf32>
    %20 = vector.shape_cast %19 : vector<1x4x16xf32> to vector<4x16xf32>
    %21 = vector.shape_cast %18 : vector<4x16xf32> to vector<1x4x16xf32>
    tpu.vector_store %arg5[%c0_9, %c0_10, %c16], %21 {strides = array<i32>} : memref<1x4x512xf32, #tpu.memory_space<vmem>>, vector<1x4x16xf32>,
    %22 = vector.extract_strided_slice %7 {offsets = [0, 16], sizes = [4, 16], strides = [1, 1]} : vector<4x256xf32> to vector<4x16xf32>
    %c0_11 = arith.constant 0 : index
    %c0_12 = arith.constant 0 : index
    %c32 = arith.constant 32 : index
    %23 = vector.load %arg5[%c0_11, %c0_12, %c32] : memref<1x4x512xf32, #tpu.memory_space<vmem>>, vector<1x4x16xf32>
    %24 = vector.shape_cast %23 : vector<1x4x16xf32> to vector<4x16xf32>
    %25 = vector.shape_cast %22 : vector<4x16xf32> to vector<1x4x16xf32>
    tpu.vector_store %arg5[%c0_11, %c0_12, %c32], %25 {strides = array<i32>} : memref<1x4x512xf32, #tpu.memory_space<vmem>>, vector<1x4x16xf32>,
    %26 = vector.extract_strided_slice %10 {offsets = [0, 16], sizes = [4, 16], strides = [1, 1]} : vector<4x256xf32> to vector<4x16xf32>
    %27 = vector.extract_strided_slice %11 {offsets = [0, 32], sizes = [4, 16], strides = [1, 1]} : vector<4x256xf32> to vector<4x16xf32>
    %28 = arith.addf %26, %27 : vector<4x16xf32>
    %c0_13 = arith.constant 0 : index
    %c0_14 = arith.constant 0 : index
    %c48 = arith.constant 48 : index
    %29 = vector.load %arg5[%c0_13, %c0_14, %c48] : memref<1x4x512xf32, #tpu.memory_space<vmem>>, vector<1x4x16xf32>
    %30 = vector.shape_cast %29 : vector<1x4x16xf32> to vector<4x16xf32>
    %31 = vector.shape_cast %28 : vector<4x16xf32> to vector<1x4x16xf32>
    tpu.vector_store %arg5[%c0_13, %c0_14, %c48], %31 {strides = array<i32>} : memref<1x4x512xf32, #tpu.memory_space<vmem>>, vector<1x4x16xf32>,
    %32 = vector.extract_strided_slice %7 {offsets = [0, 32], sizes = [4, 16], strides = [1, 1]} : vector<4x256xf32> to vector<4x16xf32>
    %c0_15 = arith.constant 0 : index
    %c0_16 = arith.constant 0 : index
    %c64 = arith.constant 64 : index
    %33 = vector.load %arg5[%c0_15, %c0_16, %c64] : memref<1x4x512xf32, #tpu.memory_space<vmem>>, vector<1x4x16xf32>
    %34 = vector.shape_cast %33 : vector<1x4x16xf32> to vector<4x16xf32>
    %35 = vector.shape_cast %32 : vector<4x16xf32> to vector<1x4x16xf32>
    tpu.vector_store %arg5[%c0_15, %c0_16, %c64], %35 {strides = array<i32>} : memref<1x4x512xf32, #tpu.memory_space<vmem>>, vector<1x4x16xf32>,
    %36 = vector.extract_strided_slice %10 {offsets = [0, 32], sizes = [4, 16], strides = [1, 1]} : vector<4x256xf32> to vector<4x16xf32>
    %37 = vector.extract_strided_slice %11 {offsets = [0, 48], sizes = [4, 16], strides = [1, 1]} : vector<4x256xf32> to vector<4x16xf32>
    %38 = arith.addf %36, %37 : vector<4x16xf32>
    %c0_17 = arith.constant 0 : index
    %c0_18 = arith.constant 0 : index
    %c80 = arith.constant 80 : index
    %39 = vector.load %arg5[%c0_17, %c0_18, %c80] : memref<1x4x512xf32, #tpu.memory_space<vmem>>, vector<1x4x16xf32>
    %40 = vector.shape_cast %39 : vector<1x4x16xf32> to vector<4x16xf32>
    %41 = vector.shape_cast %38 : vector<4x16xf32> to vector<1x4x16xf32>
    tpu.vector_store %arg5[%c0_17, %c0_18, %c80], %41 {strides = array<i32>} : memref<1x4x512xf32, #tpu.memory_space<vmem>>, vector<1x4x16xf32>,
    %42 = vector.extract_strided_slice %7 {offsets = [0, 48], sizes = [4, 16], strides = [1, 1]} : vector<4x256xf32> to vector<4x16xf32>
    %c0_19 = arith.constant 0 : index
    %c0_20 = arith.constant 0 : index
    %c96 = arith.constant 96 : index
    %43 = vector.load %arg5[%c0_19, %c0_20, %c96] : memref<1x4x512xf32, #tpu.memory_space<vmem>>, vector<1x4x16xf32>
    %44 = vector.shape_cast %43 : vector<1x4x16xf32> to vector<4x16xf32>
    %45 = vector.shape_cast %42 : vector<4x16xf32> to vector<1x4x16xf32>
    tpu.vector_store %arg5[%c0_19, %c0_20, %c96], %45 {strides = array<i32>} : memref<1x4x512xf32, #tpu.memory_space<vmem>>, vector<1x4x16xf32>,
    %46 = vector.extract_strided_slice %10 {offsets = [0, 48], sizes = [4, 16], strides = [1, 1]} : vector<4x256xf32> to vector<4x16xf32>
    %47 = vector.extract_strided_slice %11 {offsets = [0, 64], sizes = [4, 16], strides = [1, 1]} : vector<4x256xf32> to vector<4x16xf32>
    %48 = arith.addf %46, %47 : vector<4x16xf32>
    %c0_21 = arith.constant 0 : index
    %c0_22 = arith.constant 0 : index
    %c112 = arith.constant 112 : index
    %49 = vector.load %arg5[%c0_21, %c0_22, %c112] : memref<1x4x512xf32, #tpu.memory_space<vmem>>, vector<1x4x16xf32>
    %50 = vector.shape_cast %49 : vector<1x4x16xf32> to vector<4x16xf32>
    %51 = vector.shape_cast %48 : vector<4x16xf32> to vector<1x4x16xf32>
    tpu.vector_store %arg5[%c0_21, %c0_22, %c112], %51 {strides = array<i32>} : memref<1x4x512xf32, #tpu.memory_space<vmem>>, vector<1x4x16xf32>,
    %52 = vector.extract_strided_slice %7 {offsets = [0, 64], sizes = [4, 16], strides = [1, 1]} : vector<4x256xf32> to vector<4x16xf32>
    %c0_23 = arith.constant 0 : index
    %c0_24 = arith.constant 0 : index
    %c128 = arith.constant 128 : index
    %53 = vector.load %arg5[%c0_23, %c0_24, %c128] : memref<1x4x512xf32, #tpu.memory_space<vmem>>, vector<1x4x16xf32>
    %54 = vector.shape_cast %53 : vector<1x4x16xf32> to vector<4x16xf32>
    %55 = vector.shape_cast %52 : vector<4x16xf32> to vector<1x4x16xf32>
    tpu.vector_store %arg5[%c0_23, %c0_24, %c128], %55 {strides = array<i32>} : memref<1x4x512xf32, #tpu.memory_space<vmem>>, vector<1x4x16xf32>,
    %56 = vector.extract_strided_slice %10 {offsets = [0, 64], sizes = [4, 16], strides = [1, 1]} : vector<4x256xf32> to vector<4x16xf32>
    %57 = vector.extract_strided_slice %11 {offsets = [0, 80], sizes = [4, 16], strides = [1, 1]} : vector<4x256xf32> to vector<4x16xf32>
    %58 = arith.addf %56, %57 : vector<4x16xf32>
    %c0_25 = arith.constant 0 : index
    %c0_26 = arith.constant 0 : index
    %c144 = arith.constant 144 : index
    %59 = vector.load %arg5[%c0_25, %c0_26, %c144] : memref<1x4x512xf32, #tpu.memory_space<vmem>>, vector<1x4x16xf32>
    %60 = vector.shape_cast %59 : vector<1x4x16xf32> to vector<4x16xf32>
    %61 = vector.shape_cast %58 : vector<4x16xf32> to vector<1x4x16xf32>
    tpu.vector_store %arg5[%c0_25, %c0_26, %c144], %61 {strides = array<i32>} : memref<1x4x512xf32, #tpu.memory_space<vmem>>, vector<1x4x16xf32>,
    %62 = vector.extract_strided_slice %7 {offsets = [0, 80], sizes = [4, 16], strides = [1, 1]} : vector<4x256xf32> to vector<4x16xf32>
    %c0_27 = arith.constant 0 : index
    %c0_28 = arith.constant 0 : index
    %c160 = arith.constant 160 : index
    %63 = vector.load %arg5[%c0_27, %c0_28, %c160] : memref<1x4x512xf32, #tpu.memory_space<vmem>>, vector<1x4x16xf32>
    %64 = vector.shape_cast %63 : vector<1x4x16xf32> to vector<4x16xf32>
    %65 = vector.shape_cast %62 : vector<4x16xf32> to vector<1x4x16xf32>
    tpu.vector_store %arg5[%c0_27, %c0_28, %c160], %65 {strides = array<i32>} : memref<1x4x512xf32, #tpu.memory_space<vmem>>, vector<1x4x16xf32>,
    %66 = vector.extract_strided_slice %10 {offsets = [0, 80], sizes = [4, 16], strides = [1, 1]} : vector<4x256xf32> to vector<4x16xf32>
    %67 = vector.extract_strided_slice %11 {offsets = [0, 96], sizes = [4, 16], strides = [1, 1]} : vector<4x256xf32> to vector<4x16xf32>
    %68 = arith.addf %66, %67 : vector<4x16xf32>
    %c0_29 = arith.constant 0 : index
    %c0_30 = arith.constant 0 : index
    %c176 = arith.constant 176 : index
    %69 = vector.load %arg5[%c0_29, %c0_30, %c176] : memref<1x4x512xf32, #tpu.memory_space<vmem>>, vector<1x4x16xf32>
    %70 = vector.shape_cast %69 : vector<1x4x16xf32> to vector<4x16xf32>
    %71 = vector.shape_cast %68 : vector<4x16xf32> to vector<1x4x16xf32>
    tpu.vector_store %arg5[%c0_29, %c0_30, %c176], %71 {strides = array<i32>} : memref<1x4x512xf32, #tpu.memory_space<vmem>>, vector<1x4x16xf32>,
    %72 = vector.extract_strided_slice %7 {offsets = [0, 96], sizes = [4, 16], strides = [1, 1]} : vector<4x256xf32> to vector<4x16xf32>
    %c0_31 = arith.constant 0 : index
    %c0_32 = arith.constant 0 : index
    %c192 = arith.constant 192 : index
    %73 = vector.load %arg5[%c0_31, %c0_32, %c192] : memref<1x4x512xf32, #tpu.memory_space<vmem>>, vector<1x4x16xf32>
    %74 = vector.shape_cast %73 : vector<1x4x16xf32> to vector<4x16xf32>
    %75 = vector.shape_cast %72 : vector<4x16xf32> to vector<1x4x16xf32>
    tpu.vector_store %arg5[%c0_31, %c0_32, %c192], %75 {strides = array<i32>} : memref<1x4x512xf32, #tpu.memory_space<vmem>>, vector<1x4x16xf32>,
    %76 = vector.extract_strided_slice %10 {offsets = [0, 96], sizes = [4, 16], strides = [1, 1]} : vector<4x256xf32> to vector<4x16xf32>
    %77 = vector.extract_strided_slice %11 {offsets = [0, 112], sizes = [4, 16], strides = [1, 1]} : vector<4x256xf32> to vector<4x16xf32>
    %78 = arith.addf %76, %77 : vector<4x16xf32>
    %c0_33 = arith.constant 0 : index
    %c0_34 = arith.constant 0 : index
    %c208 = arith.constant 208 : index
    %79 = vector.load %arg5[%c0_33, %c0_34, %c208] : memref<1x4x512xf32, #tpu.memory_space<vmem>>, vector<1x4x16xf32>
    %80 = vector.shape_cast %79 : vector<1x4x16xf32> to vector<4x16xf32>
    %81 = vector.shape_cast %78 : vector<4x16xf32> to vector<1x4x16xf32>
    tpu.vector_store %arg5[%c0_33, %c0_34, %c208], %81 {strides = array<i32>} : memref<1x4x512xf32, #tpu.memory_space<vmem>>, vector<1x4x16xf32>,
    %82 = vector.extract_strided_slice %7 {offsets = [0, 112], sizes = [4, 16], strides = [1, 1]} : vector<4x256xf32> to vector<4x16xf32>
    %c0_35 = arith.constant 0 : index
    %c0_36 = arith.constant 0 : index
    %c224 = arith.constant 224 : index
    %83 = vector.load %arg5[%c0_35, %c0_36, %c224] : memref<1x4x512xf32, #tpu.memory_space<vmem>>, vector<1x4x16xf32>
    %84 = vector.shape_cast %83 : vector<1x4x16xf32> to vector<4x16xf32>
    %85 = vector.shape_cast %82 : vector<4x16xf32> to vector<1x4x16xf32>
    tpu.vector_store %arg5[%c0_35, %c0_36, %c224], %85 {strides = array<i32>} : memref<1x4x512xf32, #tpu.memory_space<vmem>>, vector<1x4x16xf32>,
    %86 = vector.extract_strided_slice %10 {offsets = [0, 112], sizes = [4, 16], strides = [1, 1]} : vector<4x256xf32> to vector<4x16xf32>
    %87 = vector.extract_strided_slice %11 {offsets = [0, 128], sizes = [4, 16], strides = [1, 1]} : vector<4x256xf32> to vector<4x16xf32>
    %88 = arith.addf %86, %87 : vector<4x16xf32>
    %c0_37 = arith.constant 0 : index
    %c0_38 = arith.constant 0 : index
    %c240 = arith.constant 240 : index
    %89 = vector.load %arg5[%c0_37, %c0_38, %c240] : memref<1x4x512xf32, #tpu.memory_space<vmem>>, vector<1x4x16xf32>
    %90 = vector.shape_cast %89 : vector<1x4x16xf32> to vector<4x16xf32>
    %91 = vector.shape_cast %88 : vector<4x16xf32> to vector<1x4x16xf32>
    tpu.vector_store %arg5[%c0_37, %c0_38, %c240], %91 {strides = array<i32>} : memref<1x4x512xf32, #tpu.memory_space<vmem>>, vector<1x4x16xf32>,
    %92 = vector.extract_strided_slice %7 {offsets = [0, 128], sizes = [4, 16], strides = [1, 1]} : vector<4x256xf32> to vector<4x16xf32>
    %c0_39 = arith.constant 0 : index
    %c0_40 = arith.constant 0 : index
    %c256 = arith.constant 256 : index
    %93 = vector.load %arg5[%c0_39, %c0_40, %c256] : memref<1x4x512xf32, #tpu.memory_space<vmem>>, vector<1x4x16xf32>
    %94 = vector.shape_cast %93 : vector<1x4x16xf32> to vector<4x16xf32>
    %95 = vector.shape_cast %92 : vector<4x16xf32> to vector<1x4x16xf32>
    tpu.vector_store %arg5[%c0_39, %c0_40, %c256], %95 {strides = array<i32>} : memref<1x4x512xf32, #tpu.memory_space<vmem>>, vector<1x4x16xf32>,
    %96 = vector.extract_strided_slice %10 {offsets = [0, 128], sizes = [4, 16], strides = [1, 1]} : vector<4x256xf32> to vector<4x16xf32>
    %97 = vector.extract_strided_slice %11 {offsets = [0, 144], sizes = [4, 16], strides = [1, 1]} : vector<4x256xf32> to vector<4x16xf32>
    %98 = arith.addf %96, %97 : vector<4x16xf32>
    %c0_41 = arith.constant 0 : index
    %c0_42 = arith.constant 0 : index
    %c272 = arith.constant 272 : index
    %99 = vector.load %arg5[%c0_41, %c0_42, %c272] : memref<1x4x512xf32, #tpu.memory_space<vmem>>, vector<1x4x16xf32>
    %100 = vector.shape_cast %99 : vector<1x4x16xf32> to vector<4x16xf32>
    %101 = vector.shape_cast %98 : vector<4x16xf32> to vector<1x4x16xf32>
    tpu.vector_store %arg5[%c0_41, %c0_42, %c272], %101 {strides = array<i32>} : memref<1x4x512xf32, #tpu.memory_space<vmem>>, vector<1x4x16xf32>,
    %102 = vector.extract_strided_slice %7 {offsets = [0, 144], sizes = [4, 16], strides = [1, 1]} : vector<4x256xf32> to vector<4x16xf32>
    %c0_43 = arith.constant 0 : index
    %c0_44 = arith.constant 0 : index
    %c288 = arith.constant 288 : index
    %103 = vector.load %arg5[%c0_43, %c0_44, %c288] : memref<1x4x512xf32, #tpu.memory_space<vmem>>, vector<1x4x16xf32>
    %104 = vector.shape_cast %103 : vector<1x4x16xf32> to vector<4x16xf32>
    %105 = vector.shape_cast %102 : vector<4x16xf32> to vector<1x4x16xf32>
    tpu.vector_store %arg5[%c0_43, %c0_44, %c288], %105 {strides = array<i32>} : memref<1x4x512xf32, #tpu.memory_space<vmem>>, vector<1x4x16xf32>,
    %106 = vector.extract_strided_slice %10 {offsets = [0, 144], sizes = [4, 16], strides = [1, 1]} : vector<4x256xf32> to vector<4x16xf32>
    %107 = vector.extract_strided_slice %11 {offsets = [0, 160], sizes = [4, 16], strides = [1, 1]} : vector<4x256xf32> to vector<4x16xf32>
    %108 = arith.addf %106, %107 : vector<4x16xf32>
    %c0_45 = arith.constant 0 : index
    %c0_46 = arith.constant 0 : index
    %c304 = arith.constant 304 : index
    %109 = vector.load %arg5[%c0_45, %c0_46, %c304] : memref<1x4x512xf32, #tpu.memory_space<vmem>>, vector<1x4x16xf32>
    %110 = vector.shape_cast %109 : vector<1x4x16xf32> to vector<4x16xf32>
    %111 = vector.shape_cast %108 : vector<4x16xf32> to vector<1x4x16xf32>
    tpu.vector_store %arg5[%c0_45, %c0_46, %c304], %111 {strides = array<i32>} : memref<1x4x512xf32, #tpu.memory_space<vmem>>, vector<1x4x16xf32>,
    %112 = vector.extract_strided_slice %7 {offsets = [0, 160], sizes = [4, 16], strides = [1, 1]} : vector<4x256xf32> to vector<4x16xf32>
    %c0_47 = arith.constant 0 : index
    %c0_48 = arith.constant 0 : index
    %c320 = arith.constant 320 : index
    %113 = vector.load %arg5[%c0_47, %c0_48, %c320] : memref<1x4x512xf32, #tpu.memory_space<vmem>>, vector<1x4x16xf32>
    %114 = vector.shape_cast %113 : vector<1x4x16xf32> to vector<4x16xf32>
    %115 = vector.shape_cast %112 : vector<4x16xf32> to vector<1x4x16xf32>
    tpu.vector_store %arg5[%c0_47, %c0_48, %c320], %115 {strides = array<i32>} : memref<1x4x512xf32, #tpu.memory_space<vmem>>, vector<1x4x16xf32>,
    %116 = vector.extract_strided_slice %10 {offsets = [0, 160], sizes = [4, 16], strides = [1, 1]} : vector<4x256xf32> to vector<4x16xf32>
    %117 = vector.extract_strided_slice %11 {offsets = [0, 176], sizes = [4, 16], strides = [1, 1]} : vector<4x256xf32> to vector<4x16xf32>
    %118 = arith.addf %116, %117 : vector<4x16xf32>
    %c0_49 = arith.constant 0 : index
    %c0_50 = arith.constant 0 : index
    %c336 = arith.constant 336 : index
    %119 = vector.load %arg5[%c0_49, %c0_50, %c336] : memref<1x4x512xf32, #tpu.memory_space<vmem>>, vector<1x4x16xf32>
    %120 = vector.shape_cast %119 : vector<1x4x16xf32> to vector<4x16xf32>
    %121 = vector.shape_cast %118 : vector<4x16xf32> to vector<1x4x16xf32>
    tpu.vector_store %arg5[%c0_49, %c0_50, %c336], %121 {strides = array<i32>} : memref<1x4x512xf32, #tpu.memory_space<vmem>>, vector<1x4x16xf32>,
    %122 = vector.extract_strided_slice %7 {offsets = [0, 176], sizes = [4, 16], strides = [1, 1]} : vector<4x256xf32> to vector<4x16xf32>
    %c0_51 = arith.constant 0 : index
    %c0_52 = arith.constant 0 : index
    %c352 = arith.constant 352 : index
    %123 = vector.load %arg5[%c0_51, %c0_52, %c352] : memref<1x4x512xf32, #tpu.memory_space<vmem>>, vector<1x4x16xf32>
    %124 = vector.shape_cast %123 : vector<1x4x16xf32> to vector<4x16xf32>
    %125 = vector.shape_cast %122 : vector<4x16xf32> to vector<1x4x16xf32>
    tpu.vector_store %arg5[%c0_51, %c0_52, %c352], %125 {strides = array<i32>} : memref<1x4x512xf32, #tpu.memory_space<vmem>>, vector<1x4x16xf32>,
    %126 = vector.extract_strided_slice %10 {offsets = [0, 176], sizes = [4, 16], strides = [1, 1]} : vector<4x256xf32> to vector<4x16xf32>
    %127 = vector.extract_strided_slice %11 {offsets = [0, 192], sizes = [4, 16], strides = [1, 1]} : vector<4x256xf32> to vector<4x16xf32>
    %128 = arith.addf %126, %127 : vector<4x16xf32>
    %c0_53 = arith.constant 0 : index
    %c0_54 = arith.constant 0 : index
    %c368 = arith.constant 368 : index
    %129 = vector.load %arg5[%c0_53, %c0_54, %c368] : memref<1x4x512xf32, #tpu.memory_space<vmem>>, vector<1x4x16xf32>
    %130 = vector.shape_cast %129 : vector<1x4x16xf32> to vector<4x16xf32>
    %131 = vector.shape_cast %128 : vector<4x16xf32> to vector<1x4x16xf32>
    tpu.vector_store %arg5[%c0_53, %c0_54, %c368], %131 {strides = array<i32>} : memref<1x4x512xf32, #tpu.memory_space<vmem>>, vector<1x4x16xf32>,
    %132 = vector.extract_strided_slice %7 {offsets = [0, 192], sizes = [4, 16], strides = [1, 1]} : vector<4x256xf32> to vector<4x16xf32>
    %c0_55 = arith.constant 0 : index
    %c0_56 = arith.constant 0 : index
    %c384 = arith.constant 384 : index
    %133 = vector.load %arg5[%c0_55, %c0_56, %c384] : memref<1x4x512xf32, #tpu.memory_space<vmem>>, vector<1x4x16xf32>
    %134 = vector.shape_cast %133 : vector<1x4x16xf32> to vector<4x16xf32>
    %135 = vector.shape_cast %132 : vector<4x16xf32> to vector<1x4x16xf32>
    tpu.vector_store %arg5[%c0_55, %c0_56, %c384], %135 {strides = array<i32>} : memref<1x4x512xf32, #tpu.memory_space<vmem>>, vector<1x4x16xf32>,
    %136 = vector.extract_strided_slice %10 {offsets = [0, 192], sizes = [4, 16], strides = [1, 1]} : vector<4x256xf32> to vector<4x16xf32>
    %137 = vector.extract_strided_slice %11 {offsets = [0, 208], sizes = [4, 16], strides = [1, 1]} : vector<4x256xf32> to vector<4x16xf32>
    %138 = arith.addf %136, %137 : vector<4x16xf32>
    %c0_57 = arith.constant 0 : index
    %c0_58 = arith.constant 0 : index
    %c400 = arith.constant 400 : index
    %139 = vector.load %arg5[%c0_57, %c0_58, %c400] : memref<1x4x512xf32, #tpu.memory_space<vmem>>, vector<1x4x16xf32>
    %140 = vector.shape_cast %139 : vector<1x4x16xf32> to vector<4x16xf32>
    %141 = vector.shape_cast %138 : vector<4x16xf32> to vector<1x4x16xf32>
    tpu.vector_store %arg5[%c0_57, %c0_58, %c400], %141 {strides = array<i32>} : memref<1x4x512xf32, #tpu.memory_space<vmem>>, vector<1x4x16xf32>,
    %142 = vector.extract_strided_slice %7 {offsets = [0, 208], sizes = [4, 16], strides = [1, 1]} : vector<4x256xf32> to vector<4x16xf32>
    %c0_59 = arith.constant 0 : index
    %c0_60 = arith.constant 0 : index
    %c416 = arith.constant 416 : index
    %143 = vector.load %arg5[%c0_59, %c0_60, %c416] : memref<1x4x512xf32, #tpu.memory_space<vmem>>, vector<1x4x16xf32>
    %144 = vector.shape_cast %143 : vector<1x4x16xf32> to vector<4x16xf32>
    %145 = vector.shape_cast %142 : vector<4x16xf32> to vector<1x4x16xf32>
    tpu.vector_store %arg5[%c0_59, %c0_60, %c416], %145 {strides = array<i32>} : memref<1x4x512xf32, #tpu.memory_space<vmem>>, vector<1x4x16xf32>,
    %146 = vector.extract_strided_slice %10 {offsets = [0, 208], sizes = [4, 16], strides = [1, 1]} : vector<4x256xf32> to vector<4x16xf32>
    %147 = vector.extract_strided_slice %11 {offsets = [0, 224], sizes = [4, 16], strides = [1, 1]} : vector<4x256xf32> to vector<4x16xf32>
    %148 = arith.addf %146, %147 : vector<4x16xf32>
    %c0_61 = arith.constant 0 : index
    %c0_62 = arith.constant 0 : index
    %c432 = arith.constant 432 : index
    %149 = vector.load %arg5[%c0_61, %c0_62, %c432] : memref<1x4x512xf32, #tpu.memory_space<vmem>>, vector<1x4x16xf32>
    %150 = vector.shape_cast %149 : vector<1x4x16xf32> to vector<4x16xf32>
    %151 = vector.shape_cast %148 : vector<4x16xf32> to vector<1x4x16xf32>
    tpu.vector_store %arg5[%c0_61, %c0_62, %c432], %151 {strides = array<i32>} : memref<1x4x512xf32, #tpu.memory_space<vmem>>, vector<1x4x16xf32>,
    %152 = vector.extract_strided_slice %7 {offsets = [0, 224], sizes = [4, 16], strides = [1, 1]} : vector<4x256xf32> to vector<4x16xf32>
    %c0_63 = arith.constant 0 : index
    %c0_64 = arith.constant 0 : index
    %c448 = arith.constant 448 : index
    %153 = vector.load %arg5[%c0_63, %c0_64, %c448] : memref<1x4x512xf32, #tpu.memory_space<vmem>>, vector<1x4x16xf32>
    %154 = vector.shape_cast %153 : vector<1x4x16xf32> to vector<4x16xf32>
    %155 = vector.shape_cast %152 : vector<4x16xf32> to vector<1x4x16xf32>
    tpu.vector_store %arg5[%c0_63, %c0_64, %c448], %155 {strides = array<i32>} : memref<1x4x512xf32, #tpu.memory_space<vmem>>, vector<1x4x16xf32>,
    %156 = vector.extract_strided_slice %10 {offsets = [0, 224], sizes = [4, 16], strides = [1, 1]} : vector<4x256xf32> to vector<4x16xf32>
    %157 = vector.extract_strided_slice %11 {offsets = [0, 240], sizes = [4, 16], strides = [1, 1]} : vector<4x256xf32> to vector<4x16xf32>
    %158 = arith.addf %156, %157 : vector<4x16xf32>
    %c0_65 = arith.constant 0 : index
    %c0_66 = arith.constant 0 : index
    %c464 = arith.constant 464 : index
    %159 = vector.load %arg5[%c0_65, %c0_66, %c464] : memref<1x4x512xf32, #tpu.memory_space<vmem>>, vector<1x4x16xf32>
    %160 = vector.shape_cast %159 : vector<1x4x16xf32> to vector<4x16xf32>
    %161 = vector.shape_cast %158 : vector<4x16xf32> to vector<1x4x16xf32>
    tpu.vector_store %arg5[%c0_65, %c0_66, %c464], %161 {strides = array<i32>} : memref<1x4x512xf32, #tpu.memory_space<vmem>>, vector<1x4x16xf32>,
    %162 = vector.extract_strided_slice %7 {offsets = [0, 240], sizes = [4, 16], strides = [1, 1]} : vector<4x256xf32> to vector<4x16xf32>
    %c0_67 = arith.constant 0 : index
    %c0_68 = arith.constant 0 : index
    %c480 = arith.constant 480 : index
    %163 = vector.load %arg5[%c0_67, %c0_68, %c480] : memref<1x4x512xf32, #tpu.memory_space<vmem>>, vector<1x4x16xf32>
    %164 = vector.shape_cast %163 : vector<1x4x16xf32> to vector<4x16xf32>
    %165 = vector.shape_cast %162 : vector<4x16xf32> to vector<1x4x16xf32>
    tpu.vector_store %arg5[%c0_67, %c0_68, %c480], %165 {strides = array<i32>} : memref<1x4x512xf32, #tpu.memory_space<vmem>>, vector<1x4x16xf32>,
    %166 = vector.extract_strided_slice %10 {offsets = [0, 240], sizes = [4, 16], strides = [1, 1]} : vector<4x256xf32> to vector<4x16xf32>
    %c0_69 = arith.constant 0 : index
    %c0_70 = arith.constant 0 : index
    %c496 = arith.constant 496 : index
    %167 = vector.load %arg5[%c0_69, %c0_70, %c496] : memref<1x4x512xf32, #tpu.memory_space<vmem>>, vector<1x4x16xf32>
    %168 = vector.shape_cast %167 : vector<1x4x16xf32> to vector<4x16xf32>
    %169 = vector.shape_cast %166 : vector<4x16xf32> to vector<1x4x16xf32>
    tpu.vector_store %arg5[%c0_69, %c0_70, %c496], %169 {strides = array<i32>} : memref<1x4x512xf32, #tpu.memory_space<vmem>>, vector<1x4x16xf32>,
    return
  }
  func.func @transform_0(%arg0: i32, %arg1: i32) -> (i32, i32, i32) {
    %c0_i32 = arith.constant 0 : i32
    %c0_i32_0 = arith.constant 0 : i32
    return %arg0, %c0_i32, %arg1 : i32, i32, i32
  }
  func.func @transform_1(%arg0: i32, %arg1: i32) -> (i32, i32) {
    %c0_i32 = arith.constant 0 : i32
    %c0_i32_0 = arith.constant 0 : i32
    %c0_i32_1 = arith.constant 0 : i32
    return %c0_i32, %c0_i32_0 : i32, i32
  }
  func.func @transform_2(%arg0: i32, %arg1: i32) -> (i32, i32) {
    %c0_i32 = arith.constant 0 : i32
    %c0_i32_0 = arith.constant 0 : i32
    %c0_i32_1 = arith.constant 0 : i32
    return %c0_i32, %c0_i32_0 : i32, i32
  }
  func.func @transform_3(%arg0: i32, %arg1: i32) -> (i32, i32, i32) {
    %c0_i32 = arith.constant 0 : i32
    %c0_i32_0 = arith.constant 0 : i32
    return %arg0, %c0_i32, %arg1 : i32, i32, i32
  }
}

</mosaic_0001>

<bundles_post_ra>
// kernel: upsample2x_tf.1
= control target key start
LH: loop header
LB: loop body
LE: loop exit
PB: predicated region body
PF: predicated region fallthrough
CT: control target
= control target key end

     0   :  { %s659_s12 = smov 0   ;;  %s661_s13 = smov 0   ;;  %s802_s0 = inlined_call_operand.vmem [shape: f32[2,4,256], index: 0, kind: input, shape index: {}]   ;;  %s803_s1 = inlined_call_operand.vmem [shape: f32[12,4], index: 1, kind: input, shape index: {}]   ;;  %s804_s2 = inlined_call_operand.vmem [shape: f32[4,1], index: 2, kind: input, shape index: {}]   ;;  %s805_s3 = inlined_call_operand.vmem [shape: f32[2,4,512], index: 3, kind: output, shape index: {}]  }
   0x1   :  { %s663_s14 = smov 0  }
   0x2 LB: > { %s25_s15 = sadd.s32 1, %s624_s13  ;;  %p556_p0 = scmp.ge.s32.totalorder %s628_s14, 1  ;;  %s628_s14 = sphi %s663_s14, %s13_s14   ;;  %s624_s13 = sphi %s661_s13, %s807_s13   ;;  %s620_s12 = sphi %s659_s12, %s806_s12  }
   0x3   : > { %p27_p1 = scmp.ge.s32.totalorder %s25_s15, 2  ;;  %p158_p2 = scmp.lt.s32.totalorder %s628_s14, 3 }
   0x5   : > { %s809_s15 = smov (%p27_p1, %s25_s15), 0  ;;  %p159_p3 = pnand %p556_p0, %p158_p2 }
   0x6   : > { %p191_p4 = scmp.lt.s32.totalorder (!%p159_p3), %s620_s12, 1  ;;  %v630_v0 = vmov (!%p159_p3), 0.0   ;;  %v212_v1 = vld [vmem:[%s804_s2] sm:$0xf] (!%p159_p3)  ;;  %v631_v2 = vmov (!%p159_p3), 0   ;;  %vm223_vm0 = vcmask (!%p159_p3), 1043456  }
   0x7   : > { %162 = sbr.rel (%p159_p3) target bundleno = 495 (0x1ef), region = 32  ;;  %298 = vmatprep.mubr.f32.mxu1 (!%p159_p3), %v630_v0  ;;  %292 = vmatprep.mubr.f32.mxu0 (!%p159_p3), %v630_v0  ;;  %v211_v5 = vld [vmem:[%s803_s1 + $0x8] sm:$0xf] (!%p159_p3)  ;;  %vm216_vm1 = vcmask (!%p159_p3), 31744   ;;  %v210_v6 = vld [vmem:[%s803_s1] sm:$0xff] (!%p159_p3)  ;;  %vm316_vm2 = vcmask (!%p159_p3), 125952  }
   0x8   : > { %604 = vset.pattern.permute.xlu0 (!%p159_p3), %v631_v2  ;;  %s632_s30 = smov (!%p159_p3), 112   ;;  %s633_s4 = smov (!%p159_p3), 80   ;;  %vm329_vm3 = vcmask (!%p159_p3), 257152   ;;  %vm335_vm4 = vcmask (!%p159_p3), 388352   ;;  %vm340_vm5 = vcmask (!%p159_p3), 519552   ;;  %vm345_vm6 = vcmask (!%p159_p3), 650752  }
   0x9   : > { %307 = vperm.xlu0 (!%p159_p3), %604, %v212_v1   ;;  %s634_s5 = smov (!%p159_p3), 64   ;;  %s635_s6 = smov (!%p159_p3), 96   ;;  %vm350_vm7 = vcmask (!%p159_p3), 781952   ;;  %vm355_vm8 = vcmask (!%p159_p3), 913152   ;;  %vm360_vm9 = vcmask (!%p159_p3), 1044352  }
   0xa   : > { %s636_s7 = smov (!%p159_p3), 16   ;;  %s637_s8 = smov (!%p159_p3), 32  }
   0xb   : > { %s638_s9 = smov (!%p159_p3), 48  }
   0xe   : > { %s811_s12 = smov (!%p191_p4, %s620_s12), 1 }
   0xf   : > { %s567_s18 = sshll.u32 %s811_s12, 3  ;;  %s568_s26 = sshll.u32 %s811_s12, 4 }
  0x10   : > { %s198_s21 = scalar_lea.vmem %s802_s0, %s567_s18  ;;  %s692_s29 = scalar_lea.vmem %s805_s3, %s568_s26 }
  0x11   : > { %v213_v3 = vld [vmem:[%s198_s21] sm:$0xff] }
  0x12   : > { %v215_v4 = vcombine.high %v213_v3, %v213_v3 }
  0x14   : > { %569 = vmatprep.subr.msk.mxu1 %vm223_vm0, %v215_v4  ;;  %561 = vmatprep.subr.msk.mxu0 %vm223_vm0, %v215_v4 }
  0x15   : > { %570 = vmatpush1.msk.msra.mxu1 %vm223_vm0, %v213_v3  ;;  %562 = vmatpush1.msk.msra.mxu0 %vm223_vm0, %v213_v3 }
  0x16   : > { %564 = vmatmul.mubr.msk.f32.vlgmr.msra.gmra.mrb[0].mxu1 %vm216_vm1, %v211_v5  ;;  %563 = vmatmul.mubr.msk.f32.vlgmr.msra.gmra.mrb[0].mxu0 %vm216_vm1, %v210_v6 }
  0x88   : > { %v308_v7 = vpop.permute.xlu0 %307 }
  0x89   : > { %v312_v16 = vrot.slane %v308_v7, 4 }
  0xe9   : > { %v300_v8 = vpop.f32.mrb[0].mxu1  ;;  %v294_v9 = vpop.f32.mrb[0].mxu0 }
  0xea   : > { %v319_v10 = vrot.slane %v300_v8, 4  ;;  %v302_v11 = vpop.f32.mrb[1].mxu1  ;;  %v310_v12 = vadd.f32 %v308_v7, %v294_v9  ;;  %v296_v13 = vpop.f32.mrb[1].mxu0  ;;  %v314_v17 = vadd.f32 %v312_v16, %v294_v9 }
  0xeb   : > { %v391_v14 = vrot.slane %v302_v11, 4  ;;  %v311_v15 = vadd.f32 %v308_v7, %v296_v13  ;;  %v718_v26 = vadd.f32 %v312_v16, %v296_v13 }
  0xec   : > { %320 = vrot.lane.b32.xlu0 %v319_v10, %s632_s30  ;;  %317 = vst.msk [vmem:[%s692_s29] sm:$0xf] %vm316_vm2, %v310_v12 }
  0xed   : > { %392 = vrot.lane.b32.xlu1 %v391_v14, %s632_s30  ;;  %400 = vst.msk [vmem:[%s692_s29 + $0x8] sm:$0xf] %vm316_vm2, %v311_v15  ;;  %v462_v53 = vcombine.high %v718_v26, %v718_v26 }
  0xf0   : > { %370 = vrot.lane.b32.xlu0 %v310_v12, %s633_s4 }
  0xf1   : > { %362 = vrot.lane.b32.xlu1 %v310_v12, %s634_s5 }
  0xf4   : > { %378 = vrot.lane.b32.xlu0 %v310_v12, %s635_s6 }
  0xf5   : > { %332 = vrot.lane.b32.xlu1 %v310_v12, %s636_s7 }
  0xf8   : > { %386 = vrot.lane.b32.xlu0 %v310_v12, %s632_s30 }
  0xf9   : > { %342 = vrot.lane.b32.xlu1 %v310_v12, %s637_s8 }
  0xfc   : > { %433 = vrot.lane.b32.xlu0 %v311_v15, %s634_s5 }
  0xfd   : > { %352 = vrot.lane.b32.xlu1 %v310_v12, %s638_s9 }
 0x100   : > { %441 = vrot.lane.b32.xlu0 %v311_v15, %s633_s4 }
 0x101   : > { %409 = vrot.lane.b32.xlu1 %v311_v15, %s636_s7 }
 0x104   : > { %449 = vrot.lane.b32.xlu0 %v311_v15, %s635_s6 }
 0x105   : > { %417 = vrot.lane.b32.xlu1 %v311_v15, %s637_s8 }
 0x108   : > { %457 = vrot.lane.b32.xlu0 %v311_v15, %s632_s30 }
 0x109   : > { %425 = vrot.lane.b32.xlu1 %v311_v15, %s638_s9 }
 0x15e   : > { %v321_v18 = vpop.permute.xlu0 %320 }
 0x15f   : > { %v323_v19 = vadd.f32 %v321_v18, %v314_v17  ;;  %v393_v20 = vpop.permute.xlu1 %392 }
 0x160   : > { %v395_v21 = vadd.f32 %v393_v20, %v314_v17  ;;  %v401_v27 = vadd.f32 %v393_v20, %v718_v26 }
 0x161   : > { %v325_v22 = vcombine.high %v323_v19, %v323_v19 }
 0x162   : > { %v371_v23 = vpop.permute.xlu0 %370  ;;  %v403_v29 = vcombine.high %v401_v27, %v401_v27  ;;  %v397_v46 = vcombine.high %v395_v21, %v395_v21 }
 0x163   : > { %326 = vrot.lane.b32.xlu1 %v325_v22, %s636_s7  ;;  %366 = vrot.lane.b32.xlu0 %v325_v22, %s633_s4  ;;  %v363_v24 = vpop.permute.xlu1 %362 }
 0x164   : > { %365 = vst.msk [vmem:[%s692_s29 + $0x4] sm:$0xf] %vm316_vm2, %v363_v24 }
 0x166   : > { %v379_v25 = vpop.permute.xlu0 %378 }
 0x167   : > { %337 = vrot.lane.b32.xlu1 %v325_v22, %s637_s8  ;;  %374 = vrot.lane.b32.xlu0 %v325_v22, %s635_s6  ;;  %v333_v31 = vpop.permute.xlu1 %332 }
 0x16a   : > { %v387_v28 = vpop.permute.xlu0 %386 }
 0x16b   : > { %347 = vrot.lane.b32.xlu1 %v325_v22, %s638_s9  ;;  %382 = vrot.lane.b32.xlu0 %v325_v22, %s632_s30  ;;  %v343_v32 = vpop.permute.xlu1 %342 }
 0x16e   : > { %v434_v30 = vpop.permute.xlu0 %433 }
 0x16f   : > { %404 = vrot.lane.b32.xlu1 %v403_v29, %s636_s7  ;;  %437 = vrot.lane.b32.xlu0 %v403_v29, %s633_s4  ;;  %436 = vst.msk [vmem:[%s692_s29 + $0xc] sm:$0xf] %vm316_vm2, %v434_v30  ;;  %v353_v33 = vpop.permute.xlu1 %352 }
 0x172   : > { %v442_v35 = vpop.permute.xlu0 %441 }
 0x173   : > { %413 = vrot.lane.b32.xlu1 %v403_v29, %s637_s8  ;;  %445 = vrot.lane.b32.xlu0 %v403_v29, %s635_s6  ;;  %v410_v34 = vpop.permute.xlu1 %409 }
 0x176   : > { %v450_v37 = vpop.permute.xlu0 %449 }
 0x177   : > { %421 = vrot.lane.b32.xlu1 %v403_v29, %s638_s9  ;;  %453 = vrot.lane.b32.xlu0 %v403_v29, %s632_s30  ;;  %v418_v36 = vpop.permute.xlu1 %417 }
 0x17a   : > { %v458_v39 = vpop.permute.xlu0 %457 }
 0x17b   : > { %357 = vrot.lane.b32.xlu1 %v325_v22, %s634_s5  ;;  %429 = vrot.lane.b32.xlu0 %v403_v29, %s634_s5  ;;  %v426_v38 = vpop.permute.xlu1 %425 }
 0x1d5   : > { %v327_v40 = vpop.permute.xlu1 %326  ;;  %v367_v41 = vpop.permute.xlu0 %366 }
 0x1d6   : > { %330 = vst.msk [vmem:[%s692_s29] sm:$0xf] %vm329_vm3, %v327_v40  ;;  %369 = vst.msk [vmem:[%s692_s29 + $0x4] sm:$0xf] %vm329_vm3, %v367_v41 }
 0x1d7   : > { %336 = vst.msk [vmem:[%s692_s29] sm:$0xf] %vm335_vm4, %v333_v31  ;;  %373 = vst.msk [vmem:[%s692_s29 + $0x4] sm:$0xf] %vm335_vm4, %v371_v23 }
 0x1d9   : > { %v338_v42 = vpop.permute.xlu1 %337  ;;  %v375_v43 = vpop.permute.xlu0 %374 }
 0x1da   : > { %341 = vst.msk [vmem:[%s692_s29] sm:$0xf] %vm340_vm5, %v338_v42  ;;  %377 = vst.msk [vmem:[%s692_s29 + $0x4] sm:$0xf] %vm340_vm5, %v375_v43 }
 0x1db   : > { %346 = vst.msk [vmem:[%s692_s29] sm:$0xf] %vm345_vm6, %v343_v32  ;;  %381 = vst.msk [vmem:[%s692_s29 + $0x4] sm:$0xf] %vm345_vm6, %v379_v25 }
 0x1dd   : > { %v348_v44 = vpop.permute.xlu1 %347  ;;  %v383_v45 = vpop.permute.xlu0 %382 }
 0x1de   : > { %351 = vst.msk [vmem:[%s692_s29] sm:$0xf] %vm350_vm7, %v348_v44  ;;  %385 = vst.msk [vmem:[%s692_s29 + $0x4] sm:$0xf] %vm350_vm7, %v383_v45 }
 0x1df   : > { %389 = vst.msk [vmem:[%s692_s29 + $0x4] sm:$0xf] %vm355_vm8, %v387_v28  ;;  %356 = vst.msk [vmem:[%s692_s29] sm:$0xf] %vm355_vm8, %v353_v33 }
 0x1e0   : > { %399 = vst.msk [vmem:[%s692_s29 + $0x4] sm:$0xf] %vm360_vm9, %v397_v46 }
 0x1e1   : > { %v405_v47 = vpop.permute.xlu1 %404  ;;  %v438_v48 = vpop.permute.xlu0 %437 }
 0x1e2   : > { %407 = vst.msk [vmem:[%s692_s29 + $0x8] sm:$0xf] %vm329_vm3, %v405_v47  ;;  %440 = vst.msk [vmem:[%s692_s29 + $0xc] sm:$0xf] %vm329_vm3, %v438_v48 }
 0x1e3   : > { %412 = vst.msk [vmem:[%s692_s29 + $0x8] sm:$0xf] %vm335_vm4, %v410_v34  ;;  %444 = vst.msk [vmem:[%s692_s29 + $0xc] sm:$0xf] %vm335_vm4, %v442_v35 }
 0x1e5   : > { %v414_v49 = vpop.permute.xlu1 %413  ;;  %v446_v50 = vpop.permute.xlu0 %445 }
 0x1e6   : > { %416 = vst.msk [vmem:[%s692_s29 + $0x8] sm:$0xf] %vm340_vm5, %v414_v49  ;;  %448 = vst.msk [vmem:[%s692_s29 + $0xc] sm:$0xf] %vm340_vm5, %v446_v50 }
 0x1e7   : > { %420 = vst.msk [vmem:[%s692_s29 + $0x8] sm:$0xf] %vm345_vm6, %v418_v36  ;;  %452 = vst.msk [vmem:[%s692_s29 + $0xc] sm:$0xf] %vm345_vm6, %v450_v37 }
 0x1e9   : > { %v422_v51 = vpop.permute.xlu1 %421  ;;  %v454_v52 = vpop.permute.xlu0 %453 }
 0x1ea   : > { %424 = vst.msk [vmem:[%s692_s29 + $0x8] sm:$0xf] %vm350_vm7, %v422_v51  ;;  %456 = vst.msk [vmem:[%s692_s29 + $0xc] sm:$0xf] %vm350_vm7, %v454_v52 }
 0x1eb   : > { %428 = vst.msk [vmem:[%s692_s29 + $0x8] sm:$0xf] %vm355_vm8, %v426_v38  ;;  %460 = vst.msk [vmem:[%s692_s29 + $0xc] sm:$0xf] %vm355_vm8, %v458_v39 }
 0x1ec   : > { %464 = vst.msk [vmem:[%s692_s29 + $0xc] sm:$0xf] %vm360_vm9, %v462_v53 }
 0x1ed   : > { %v358_v54 = vpop.permute.xlu1 %357  ;;  %v430_v55 = vpop.permute.xlu0 %429 }
 0x1ee   : > { %361 = vst.msk [vmem:[%s692_s29] sm:$0xf] %vm360_vm9, %v358_v54  ;;  %432 = vst.msk [vmem:[%s692_s29 + $0x8] sm:$0xf] %vm360_vm9, %v430_v55 }
 0x1ef PF: > { %s13_s14 = sadd.s32 1, %s628_s14   ;;  %s806_s12 = smov %s624_s13 }
 0x1f0   : > { %p10_p5 = scmp.ge.s32.totalorder %s13_s14, 4   ;;  %s807_s13 = smov %s809_s15 }
 0x1f2   :  { %12 = sbr.rel (!%p10_p5) target bundleno = 2 (0x2), region = 62 }

</bundles_post_ra>
